<compile_context>
chip_gen: v7x
topology: tpu7x:2x2x1
jax: 0.10.0
libtpu: 0.0.40
codegen_flags: <defaults>
</compile_context>

<pallas_src>
import numpy as np
from math import exp

import jax
import jax.numpy as jnp
from jax.experimental import pallas as pl
from jax.experimental.pallas import tpu as pltpu

WINDOW_SIZE = 11
SIGMA = 1.5
C1 = 0.01 ** 2
C2 = 0.03 ** 2


def _gaussian_1d(window_size: int, sigma: float) -> np.ndarray:
    g = np.array(
        [exp(-((x - window_size // 2) ** 2) / float(2 * sigma ** 2))
         for x in range(window_size)],
        dtype=np.float64,
    )
    return (g / g.sum()).astype(np.float32)


def _ssim_block_kernel(p1_ref, p2_ref, grow_ref, gcol_ref, sel_ref, out_ref):
    # p1_ref / p2_ref : (1, Hp, T*Wp)  zero-padded planes, T planes side by side
    # grow_ref        : (H, Hp)        vertical 1D-Gaussian band matrix
    # gcol_ref        : (T*Wp, T*W)    block-diagonal horizontal band matrix
    # sel_ref         : (T*W, T)       0/1 per-plane column-selection matrix
    # out_ref         : (1, T)         per-plane SSIM-map sums
    p1 = p1_ref[0].astype(jnp.float32)      # (Hp, T*Wp)
    p2 = p2_ref[0].astype(jnp.float32)
    grow = grow_ref[...]                    # (H, Hp)
    gcol = gcol_ref[...]                    # (T*Wp, T*W)
    sel = sel_ref[...]                      # (T*W, T)

    # Hoisted products: computed once on the padded planes (conv of x*x with
    # zero padding == sum of taps over pad(x)^2, so padding stays correct).
    q11 = p1 * p1
    q22 = p2 * p2
    q12 = p1 * p2

    def blur(x):
        v = jnp.dot(grow, x, preferred_element_type=jnp.float32)   # (H, T*Wp)
        return jnp.dot(v, gcol, preferred_element_type=jnp.float32)  # (H, T*W)

    mu1 = blur(p1)
    mu2 = blur(p2)
    s11 = blur(q11)
    s22 = blur(q22)
    s12 = blur(q12)

    mu1_sq = mu1 * mu1
    mu2_sq = mu2 * mu2
    mu1_mu2 = mu1 * mu2
    sigma1_sq = s11 - mu1_sq
    sigma2_sq = s22 - mu2_sq
    sigma12 = s12 - mu1_mu2

    ssim_map = ((2.0 * mu1_mu2 + C1) * (2.0 * sigma12 + C2)) / (
        (mu1_sq + mu2_sq + C1) * (sigma1_sq + sigma2_sq + C2))   # (H, T*W)

    # Per-plane spatial sums: select each plane's W-wide lane group, then
    # reduce over rows -> (1, T) lane-packed output row.
    per_plane = jnp.dot(ssim_map, sel, preferred_element_type=jnp.float32)  # (H, T)
    out_ref[...] = jnp.sum(per_plane, axis=0, keepdims=True)                # (1, T)


def ssim_pallas(img1, img2, window_size=WINDOW_SIZE, size_average=True):
    """SSIM forward, matching torch SSIM(window_size=11)."""
    B, C, H, W = img1.shape
    BC = B * C
    pad = window_size // 2
    Hp, Wp = H + 2 * pad, W + 2 * pad

    # Planes per grid step: aim for >=128 lanes in the blurred stats while
    # keeping the per-step VMEM working set modest.
    lane_target = max(1, 128 // max(W, 1))
    vmem_cap = max(1, (8 * 2 ** 20) // (16 * Hp * Wp * 4))
    T = int(max(1, min(BC, lane_target, vmem_cap, 16)))
    n_blocks = -(-BC // T)
    BC_pad = n_blocks * T
    LW = T * Wp
    BCW = T * W

    g1 = _gaussian_1d(window_size, SIGMA)

    # Band matrices for the separable blur (built once on host).
    grow = np.zeros((H, Hp), np.float32)
    for i in range(H):
        grow[i, i:i + window_size] = g1
    gcol1 = np.zeros((Wp, W), np.float32)
    for j in range(W):
        gcol1[j:j + window_size, j] = g1
    gcol = np.zeros((LW, BCW), np.float32)
    sel = np.zeros((BCW, T), np.float32)
    for p in range(T):
        gcol[p * Wp:(p + 1) * Wp, p * W:(p + 1) * W] = gcol1
        sel[p * W:(p + 1) * W, p] = 1.0

    def to_blocks(x):
        x = x.astype(jnp.float32).reshape(BC, H, W)
        # pad plane count (extra zero planes are dropped after the kernel)
        x = jnp.pad(x, ((0, BC_pad - BC), (pad, pad), (pad, pad)))
        x = x.reshape(n_blocks, T, Hp, Wp).transpose(0, 2, 1, 3)
        return x.reshape(n_blocks, Hp, LW)

    p1 = to_blocks(img1)
    p2 = to_blocks(img2)

    # Explicit scoped-VMEM budget sized to the tile (with headroom).
    est = 4 * ((2 * 2 + 3) * Hp * LW + 16 * H * BCW
               + 2 * (H * Hp + LW * BCW + BCW * T) + 2 * T)
    vmem_limit = int(min(64 * 2 ** 20, max(4 * est, 2 * 2 ** 20)))

    partial = pl.pallas_call(
        _ssim_block_kernel,
        out_shape=jax.ShapeDtypeStruct((n_blocks, T), jnp.float32),
        grid_spec=pltpu.PrefetchScalarGridSpec(
            num_scalar_prefetch=0,
            grid=(n_blocks,),
            in_specs=[
                pl.BlockSpec((1, Hp, LW), lambda i: (i, 0, 0)),
                pl.BlockSpec((1, Hp, LW), lambda i: (i, 0, 0)),
                pl.BlockSpec((H, Hp), lambda i: (0, 0)),
                pl.BlockSpec((LW, BCW), lambda i: (0, 0)),
                pl.BlockSpec((BCW, T), lambda i: (0, 0)),
            ],
            out_specs=pl.BlockSpec((1, T), lambda i: (i, 0)),
        ),
        compiler_params=pltpu.CompilerParams(
            dimension_semantics=("parallel",),
            vmem_limit_bytes=vmem_limit),
    )(p1, p2, jnp.asarray(grow), jnp.asarray(gcol), jnp.asarray(sel))

    sums = partial.reshape(BC_pad)[:BC].reshape(B, C)
    if size_average:
        return jnp.sum(sums) / (BC * H * W)
    # torch: ssim_map.mean(1).mean(1).mean(1) == per-sample mean over (C,H,W)
    return jnp.sum(sums, axis=1) / (C * H * W)


def ssim_ref(img1, img2, window_size=WINDOW_SIZE, size_average=True):
    """Pure-JAX reference (depthwise conv via lax.conv_general_dilated)."""
    B, C, H, W = img1.shape
    pad = window_size // 2
    g1 = _gaussian_1d(window_size, SIGMA)
    w2 = jnp.asarray(np.outer(g1, g1).astype(np.float32))
    kern = jnp.broadcast_to(w2, (C, 1, window_size, window_size))

    def conv(x):
        return jax.lax.conv_general_dilated(
            x, kern, window_strides=(1, 1), padding=[(pad, pad), (pad, pad)],
            feature_group_count=C,
            dimension_numbers=("NCHW", "OIHW", "NCHW"))

    mu1 = conv(img1)
    mu2 = conv(img2)
    mu1_sq, mu2_sq, mu1_mu2 = mu1 * mu1, mu2 * mu2, mu1 * mu2
    sigma1_sq = conv(img1 * img1) - mu1_sq
    sigma2_sq = conv(img2 * img2) - mu2_sq
    sigma12 = conv(img1 * img2) - mu1_mu2
    ssim_map = ((2 * mu1_mu2 + C1) * (2 * sigma12 + C2)) / (
        (mu1_sq + mu2_sq + C1) * (sigma1_sq + sigma2_sq + C2))
    if size_average:
        return jnp.mean(ssim_map)
    return jnp.mean(ssim_map, axis=(1, 2, 3))


if __name__ == "__main__":
    key = jax.random.PRNGKey(0)
    k1, k2 = jax.random.split(key)
    B, C, H, W = 2, 4, 16, 16
    img1 = jax.random.uniform(k1, (B, C, H, W), dtype=jnp.float32)
    img2 = jax.random.uniform(k2, (B, C, H, W), dtype=jnp.float32)

    out = jax.block_until_ready(ssim_pallas(img1, img2))
    ref = jax.block_until_ready(ssim_ref(img1, img2))
    np.testing.assert_allclose(np.asarray(out), np.asarray(ref),
                               rtol=1e-4, atol=1e-4)

    out_ns = jax.block_until_ready(ssim_pallas(img1, img2, size_average=False))
    ref_ns = jax.block_until_ready(ssim_ref(img1, img2, size_average=False))
    np.testing.assert_allclose(np.asarray(out_ns), np.asarray(ref_ns),
                               rtol=1e-4, atol=1e-4)

    print("KERNEL_OK")
</pallas_src>

<mosaic_0001>
module attributes {stable_mosaic.version = 11 : i64} {
  func.func @_ssim_block_kernel(%arg0: i32, %arg1: memref<1x26x208xf32, #tpu.memory_space<vmem>>, %arg2: memref<1x26x208xf32, #tpu.memory_space<vmem>>, %arg3: memref<16x26xf32, #tpu.memory_space<vmem>>, %arg4: memref<208x128xf32, #tpu.memory_space<vmem>>, %arg5: memref<128x8xf32, #tpu.memory_space<vmem>>, %arg6: memref<1x8xf32, #tpu.memory_space<vmem>>) attributes {dimension_semantics = [#tpu.dimension_semantics<parallel>], iteration_bounds = array<i64: 1>, scalar_prefetch = 0 : i64, scratch_operands = 0 : i64, tpu.core_type = #tpu.core_type<tc>, window_params = [{transform_indices = @transform_0, window_bounds = array<i64: 1, 26, 208>}, {transform_indices = @transform_1, window_bounds = array<i64: 1, 26, 208>}, {pipeline_mode = #tpu.pipeline_mode<synchronous>, transform_indices = @transform_2, window_bounds = array<i64: 16, 26>}, {pipeline_mode = #tpu.pipeline_mode<synchronous>, transform_indices = @transform_3, window_bounds = array<i64: 208, 128>}, {pipeline_mode = #tpu.pipeline_mode<synchronous>, transform_indices = @transform_4, window_bounds = array<i64: 128, 8>}, {transform_indices = @transform_5, window_bounds = array<i64: 1, 8>}]} {
    %c0 = arith.constant 0 : index
    %c0_0 = arith.constant 0 : index
    %c0_1 = arith.constant 0 : index
    %0 = vector.load %arg1[%c0, %c0_0, %c0_1] : memref<1x26x208xf32, #tpu.memory_space<vmem>>, vector<1x26x208xf32>
    %1 = vector.shape_cast %0 : vector<1x26x208xf32> to vector<26x208xf32>
    %c0_2 = arith.constant 0 : index
    %c0_3 = arith.constant 0 : index
    %c0_4 = arith.constant 0 : index
    %2 = vector.load %arg2[%c0_2, %c0_3, %c0_4] : memref<1x26x208xf32, #tpu.memory_space<vmem>>, vector<1x26x208xf32>
    %3 = vector.shape_cast %2 : vector<1x26x208xf32> to vector<26x208xf32>
    %c0_5 = arith.constant 0 : index
    %c0_6 = arith.constant 0 : index
    %4 = vector.load %arg3[%c0_5, %c0_6] : memref<16x26xf32, #tpu.memory_space<vmem>>, vector<16x26xf32>
    %c0_7 = arith.constant 0 : index
    %c0_8 = arith.constant 0 : index
    %5 = vector.load %arg4[%c0_7, %c0_8] : memref<208x128xf32, #tpu.memory_space<vmem>>, vector<208x128xf32>
    %c0_9 = arith.constant 0 : index
    %c0_10 = arith.constant 0 : index
    %6 = vector.load %arg5[%c0_9, %c0_10] : memref<128x8xf32, #tpu.memory_space<vmem>>, vector<128x8xf32>
    %7 = arith.mulf %1, %1 : vector<26x208xf32>
    %8 = arith.mulf %3, %3 : vector<26x208xf32>
    %9 = arith.mulf %1, %3 : vector<26x208xf32>
    %cst = arith.constant dense<0.000000e+00> : vector<16x208xf32>
    %10 = tpu.matmul %4, %1, %cst {dimension_numbers = #tpu.dot_dimension_numbers<[1], [0], [0], [1], [0, 0, 1, 1], [], []>} : vector<16x26xf32>, vector<26x208xf32>, vector<16x208xf32> -> vector<16x208xf32>
    %cst_11 = arith.constant dense<0.000000e+00> : vector<16x128xf32>
    %11 = tpu.matmul %10, %5, %cst_11 {dimension_numbers = #tpu.dot_dimension_numbers<[1], [0], [0], [1], [0, 0, 1, 1], [], []>} : vector<16x208xf32>, vector<208x128xf32>, vector<16x128xf32> -> vector<16x128xf32>
    %cst_12 = arith.constant dense<0.000000e+00> : vector<16x208xf32>
    %12 = tpu.matmul %4, %3, %cst_12 {dimension_numbers = #tpu.dot_dimension_numbers<[1], [0], [0], [1], [0, 0, 1, 1], [], []>} : vector<16x26xf32>, vector<26x208xf32>, vector<16x208xf32> -> vector<16x208xf32>
    %cst_13 = arith.constant dense<0.000000e+00> : vector<16x128xf32>
    %13 = tpu.matmul %12, %5, %cst_13 {dimension_numbers = #tpu.dot_dimension_numbers<[1], [0], [0], [1], [0, 0, 1, 1], [], []>} : vector<16x208xf32>, vector<208x128xf32>, vector<16x128xf32> -> vector<16x128xf32>
    %cst_14 = arith.constant dense<0.000000e+00> : vector<16x208xf32>
    %14 = tpu.matmul %4, %7, %cst_14 {dimension_numbers = #tpu.dot_dimension_numbers<[1], [0], [0], [1], [0, 0, 1, 1], [], []>} : vector<16x26xf32>, vector<26x208xf32>, vector<16x208xf32> -> vector<16x208xf32>
    %cst_15 = arith.constant dense<0.000000e+00> : vector<16x128xf32>
    %15 = tpu.matmul %14, %5, %cst_15 {dimension_numbers = #tpu.dot_dimension_numbers<[1], [0], [0], [1], [0, 0, 1, 1], [], []>} : vector<16x208xf32>, vector<208x128xf32>, vector<16x128xf32> -> vector<16x128xf32>
    %cst_16 = arith.constant dense<0.000000e+00> : vector<16x208xf32>
    %16 = tpu.matmul %4, %8, %cst_16 {dimension_numbers = #tpu.dot_dimension_numbers<[1], [0], [0], [1], [0, 0, 1, 1], [], []>} : vector<16x26xf32>, vector<26x208xf32>, vector<16x208xf32> -> vector<16x208xf32>
    %cst_17 = arith.constant dense<0.000000e+00> : vector<16x128xf32>
    %17 = tpu.matmul %16, %5, %cst_17 {dimension_numbers = #tpu.dot_dimension_numbers<[1], [0], [0], [1], [0, 0, 1, 1], [], []>} : vector<16x208xf32>, vector<208x128xf32>, vector<16x128xf32> -> vector<16x128xf32>
    %cst_18 = arith.constant dense<0.000000e+00> : vector<16x208xf32>
    %18 = tpu.matmul %4, %9, %cst_18 {dimension_numbers = #tpu.dot_dimension_numbers<[1], [0], [0], [1], [0, 0, 1, 1], [], []>} : vector<16x26xf32>, vector<26x208xf32>, vector<16x208xf32> -> vector<16x208xf32>
    %cst_19 = arith.constant dense<0.000000e+00> : vector<16x128xf32>
    %19 = tpu.matmul %18, %5, %cst_19 {dimension_numbers = #tpu.dot_dimension_numbers<[1], [0], [0], [1], [0, 0, 1, 1], [], []>} : vector<16x208xf32>, vector<208x128xf32>, vector<16x128xf32> -> vector<16x128xf32>
    %20 = arith.mulf %11, %11 : vector<16x128xf32>
    %21 = arith.mulf %13, %13 : vector<16x128xf32>
    %22 = arith.mulf %11, %13 : vector<16x128xf32>
    %23 = arith.subf %15, %20 : vector<16x128xf32>
    %24 = arith.subf %17, %21 : vector<16x128xf32>
    %25 = arith.subf %19, %22 : vector<16x128xf32>
    %cst_20 = arith.constant 2.000000e+00 : f32
    %26 = vector.broadcast %cst_20 : f32 to vector<16x128xf32>
    %27 = arith.mulf %26, %22 : vector<16x128xf32>
    %cst_21 = arith.constant 9.99999974E-5 : f32
    %28 = vector.broadcast %cst_21 : f32 to vector<16x128xf32>
    %29 = arith.addf %27, %28 : vector<16x128xf32>
    %cst_22 = arith.constant 2.000000e+00 : f32
    %30 = vector.broadcast %cst_22 : f32 to vector<16x128xf32>
    %31 = arith.mulf %30, %25 : vector<16x128xf32>
    %cst_23 = arith.constant 8.99999984E-4 : f32
    %32 = vector.broadcast %cst_23 : f32 to vector<16x128xf32>
    %33 = arith.addf %31, %32 : vector<16x128xf32>
    %34 = arith.mulf %29, %33 : vector<16x128xf32>
    %35 = arith.addf %20, %21 : vector<16x128xf32>
    %cst_24 = arith.constant 9.99999974E-5 : f32
    %36 = vector.broadcast %cst_24 : f32 to vector<16x128xf32>
    %37 = arith.addf %35, %36 : vector<16x128xf32>
    %38 = arith.addf %23, %24 : vector<16x128xf32>
    %cst_25 = arith.constant 8.99999984E-4 : f32
    %39 = vector.broadcast %cst_25 : f32 to vector<16x128xf32>
    %40 = arith.addf %38, %39 : vector<16x128xf32>
    %41 = arith.mulf %37, %40 : vector<16x128xf32>
    %42 = arith.divf %34, %41 : vector<16x128xf32>
    %cst_26 = arith.constant dense<0.000000e+00> : vector<16x8xf32>
    %43 = tpu.matmul %42, %6, %cst_26 {dimension_numbers = #tpu.dot_dimension_numbers<[1], [0], [0], [1], [0, 0, 1, 1], [], []>} : vector<16x128xf32>, vector<128x8xf32>, vector<16x8xf32> -> vector<16x8xf32>
    %cst_27 = arith.constant dense<0.000000e+00> : vector<8xf32>
    %44 = vector.multi_reduction <add>, %43, %cst_27 [0] : vector<16x8xf32> to vector<8xf32>
    %45 = vector.shape_cast %44 : vector<8xf32> to vector<1x8xf32>
    %c0_28 = arith.constant 0 : index
    %c0_29 = arith.constant 0 : index
    %46 = vector.load %arg6[%c0_28, %c0_29] : memref<1x8xf32, #tpu.memory_space<vmem>>, vector<1x8xf32>
    tpu.vector_store %arg6[%c0_28, %c0_29], %45 {strides = array<i32>} : memref<1x8xf32, #tpu.memory_space<vmem>>, vector<1x8xf32>,
    return
  }
  func.func @transform_0(%arg0: i32) -> (i32, i32, i32) {
    %c0_i32 = arith.constant 0 : i32
    %c0_i32_0 = arith.constant 0 : i32
    %c0_i32_1 = arith.constant 0 : i32
    return %arg0, %c0_i32, %c0_i32_0 : i32, i32, i32
  }
  func.func @transform_1(%arg0: i32) -> (i32, i32, i32) {
    %c0_i32 = arith.constant 0 : i32
    %c0_i32_0 = arith.constant 0 : i32
    %c0_i32_1 = arith.constant 0 : i32
    return %arg0, %c0_i32, %c0_i32_0 : i32, i32, i32
  }
  func.func @transform_2(%arg0: i32) -> (i32, i32) {
    %c0_i32 = arith.constant 0 : i32
    %c0_i32_0 = arith.constant 0 : i32
    %c0_i32_1 = arith.constant 0 : i32
    return %c0_i32, %c0_i32_0 : i32, i32
  }
  func.func @transform_3(%arg0: i32) -> (i32, i32) {
    %c0_i32 = arith.constant 0 : i32
    %c0_i32_0 = arith.constant 0 : i32
    %c0_i32_1 = arith.constant 0 : i32
    return %c0_i32, %c0_i32_0 : i32, i32
  }
  func.func @transform_4(%arg0: i32) -> (i32, i32) {
    %c0_i32 = arith.constant 0 : i32
    %c0_i32_0 = arith.constant 0 : i32
    %c0_i32_1 = arith.constant 0 : i32
    return %c0_i32, %c0_i32_0 : i32, i32
  }
  func.func @transform_5(%arg0: i32) -> (i32, i32) {
    %c0_i32 = arith.constant 0 : i32
    %c0_i32_0 = arith.constant 0 : i32
    return %arg0, %c0_i32 : i32, i32
  }
}

</mosaic_0001>

<bundles_post_ra>
// kernel: tpu_custom_call.1
= control target key start
LH: loop header
LB: loop body
LE: loop exit
PB: predicated region body
PF: predicated region fallthrough
CT: control target
= control target key end

     0   :  { %vm112_vm0 = vcmask 1041408   ;;  %v1463_v5 = vmov 0.0   ;;  %vm1464_vm1 = vmmov 1   ;;  %v1465_v20 = vmov 0.0|0.0   ;;  %s2039_s0 = inlined_call_operand.vmem [shape: f32[1,26,208], index: 0, kind: input, shape index: {}]   ;;  %s2040_s1 = inlined_call_operand.vmem [shape: f32[1,26,208], index: 1, kind: input, shape index: {}]   ;;  %s2041_s2 = inlined_call_operand.vmem [shape: f32[16,26], index: 2, kind: input, shape index: {}]   ;;  %s2042_s3 = inlined_call_operand.vmem [shape: f32[208,128], index: 3, kind: input, shape index: {}]   ;;  %s2043_s4 = inlined_call_operand.vmem [shape: f32[128,8], index: 4, kind: input, shape index: {}]   ;;  %s2044_s5 = inlined_call_operand.hbm [shape: f32[1,8], index: 5, kind: output, shape index: {}]  }
   0x1   :  { %v1500_v0 = vld [vmem:[%s2039_s0 + $0x8] sm:$0xff]  ;;  %v1505_v1 = vld [vmem:[%s2039_s0 + $0x18] sm:$0xff]  ;;  %v1512_v3 = vld [vmem:[%s2039_s0] sm:$0xff]  ;;  %183 = vmatprep.mubr.f32.mxu0 %v1463_v5  ;;  %1164 = vmatprep.subr.bf16.mxu1 %v1465_v20  ;;  %vm105_vm3 = vcmask 211968  }
   0x2   :  { %v1154_v2 = vpack.c.bf16 %v1505_v1, %v1500_v0  ;;  %v1517_v4 = vld [vmem:[%s2039_s0 + $0x10] sm:$0xff]  ;;  %v1523_v6 = vld [vmem:[%s2040_s1 + $0x8] sm:$0xff]  ;;  %v1528_v7 = vld [vmem:[%s2040_s1 + $0x18] sm:$0xff] }
   0x3   :  { %v1156_v8 = vpack.c.bf16 %v1517_v4, %v1512_v3  ;;  %v1535_v9 = vld [vmem:[%s2039_s0 + $0x28] sm:$0xff]  ;;  %v1540_v10 = vld [vmem:[%s2039_s0 + $0x38] sm:$0x3]  ;;  %vm1542_vm2 = vmpackc.low %vm112_vm0, %vm1464_vm1  ;;  %v1203_v18 = vpack.c.bf16 %v1528_v7, %v1523_v6 }
   0x4   :  { %1155 = vmatprep.subr.bf16.mxu0 %v1154_v2  ;;  %v1549_v12 = vld [vmem:[%s2039_s0 + $0x20] sm:$0xff]  ;;  %v1158_v13 = vpack.c.bf16 %v1540_v10, %v1535_v9  ;;  %v1556_v14 = vld [vmem:[%s2039_s0 + $0x30] sm:$0x3]  ;;  %v1575_v19 = vld [vmem:[%s2040_s1 + $0x28] sm:$0xff] }
   0x5   :  { %1157 = vmatpush1.bf16.msra.mxu0 %v1156_v8  ;;  %v1561_v15 = vld [vmem:[%s2040_s1] sm:$0xff]  ;;  %v1566_v16 = vld [vmem:[%s2040_s1 + $0x10] sm:$0xff]  ;;  %v1161_v17 = vpack.c.bf16 %v1556_v14, %v1549_v12  ;;  %v1583_v21 = vld [vmem:[%s2040_s1 + $0x38] sm:$0x3] }
   0x6   :  { %1160 = vmatprep.subr.msk.bf16.mxu0 %vm1542_vm2, %v1158_v13  ;;  %v39_v22 = vld [vmem:[%s2042_s3] sm:$0xff]  ;;  %v40_v23 = vld [vmem:[%s2042_s3 + $0x8] sm:$0xff]  ;;  %v41_v25 = vld [vmem:[%s2042_s3 + $0x10] sm:$0xff]  ;;  %v1205_v28 = vpack.c.bf16 %v1566_v16, %v1561_v15  ;;  %v1207_v31 = vpack.c.bf16 %v1583_v21, %v1575_v19 }
   0x7   :  { %v1591_v24 = vpack.c.bf16 %v40_v23, %v39_v22  ;;  %v42_v26 = vld [vmem:[%s2042_s3 + $0x18] sm:$0xff]  ;;  %v1604_v27 = vld [vmem:[%s2041_s2] sm:$0xff]  ;;  %v1616_v30 = vld [vmem:[%s2040_s1 + $0x30] sm:$0x3] }
   0x8   :  { %v1611_v29 = vld [vmem:[%s2040_s1 + $0x20] sm:$0xff]  ;;  %v1621_v32 = vpack.c.bf16 %v42_v26, %v41_v25  ;;  %v44_v34 = vld [vmem:[%s2042_s3 + $0x28] sm:$0xff]  ;;  %v45_v38 = vld [vmem:[%s2042_s3 + $0x30] sm:$0xff] }
   0x9   :  { %1163 = vmatpush1.bf16.msk.msra.mxu0 %vm1542_vm2, %v1161_v17  ;;  %1166 = vmatpush1.bf16.msra.mxu1 %v1591_v24  ;;  %v43_v33 = vld [vmem:[%s2042_s3 + $0x20] sm:$0xff]  ;;  %v1636_v35 = vld [vmem:[%s2041_s2 + $0x8] sm:$0xff]  ;;  %v1210_v36 = vpack.c.bf16 %v1616_v30, %v1611_v29  ;;  %v46_v39 = vld [vmem:[%s2042_s3 + $0x38] sm:$0xff] }
   0xa   :  { %1204 = vmatprep.subr.bf16.mxu0 %v1203_v18  ;;  %1167 = vmatprep.subr.bf16.mxu1 %v1465_v20  ;;  %v1643_v37 = vpack.c.bf16 %v44_v34, %v43_v33 }
   0xc   :  { %1073 = vmatmul.mubr.msk.f32.vlgmr.msra.gmra.mrb[0].mxu0 %vm105_vm3, %v1604_v27 }
   0xd   :  { %1206 = vmatpush1.bf16.msra.mxu0 %v1205_v28  ;;  %189 = vmatprep.mubr.f32.mxu0 %v1463_v5 }
   0xe   :  { %1209 = vmatprep.subr.msk.bf16.mxu0 %vm1542_vm2, %v1207_v31  ;;  %1169 = vmatpush1.bf16.msra.mxu1 %v1621_v32 }
   0xf   :  { %1170 = vmatprep.subr.bf16.mxu1 %v1465_v20 }
  0x10   :  { %10 = vsyncpa [#allocation3], 0  ;;  %1074 = vmatmul.mubr.msk.f32.gmra.mrb[2].mxu0 %vm105_vm3, %v1636_v35  ;;  %v1659_v40 = vpack.c.bf16 %v46_v39, %v45_v38  ;;  %v47_v41 = vld [vmem:[%s2042_s3 + $0x40] sm:$0xff]  ;;  %v48_v42 = vld [vmem:[%s2042_s3 + $0x48] sm:$0xff]  ;;  %v82_v18 = vmul.f32 %v1500_v0, %v1500_v0  ;;  %v84_v22 = vmul.f32 %v1505_v1, %v1505_v1  ;;  %v81_v23 = vmul.f32 %v1512_v3, %v1512_v3 }
  0x11   :  { %1212 = vmatpush1.bf16.msk.msra.mxu0 %vm1542_vm2, %v1210_v36  ;;  %348 = vmatprep.mubr.f32.mxu0 %v1463_v5  ;;  %v1674_v43 = vpack.c.bf16 %v48_v42, %v47_v41  ;;  %v49_v44 = vld [vmem:[%s2042_s3 + $0x50] sm:$0xff]  ;;  %v50_v45 = vld [vmem:[%s2042_s3 + $0x58] sm:$0xff]  ;;  %v51_v47 = vld [vmem:[%s2042_s3 + $0x60] sm:$0xff]  ;;  %v83_v25 = vmul.f32 %v1517_v4, %v1517_v4  ;;  %v85_v28 = vmul.f32 %v1549_v12, %v1549_v12  ;;  %vm196_vm4 = vcmask 654336  }
  0x12   :  { %1213 = vmatprep.subr.bf16.mxu0 %v1465_v20  ;;  %1172 = vmatpush1.bf16.msra.mxu1 %v1643_v37  ;;  %v1688_v46 = vpack.c.bf16 %v50_v45, %v49_v44  ;;  %v52_v48 = vld [vmem:[%s2042_s3 + $0x68] sm:$0xff]  ;;  %v53_v50 = vld [vmem:[%s2042_s3 + $0x70] sm:$0xff]  ;;  %v54_v51 = vld [vmem:[%s2042_s3 + $0x78] sm:$0xff]  ;;  %v1252_v26 = vpack.c.bf16 %v84_v22, %v82_v18  ;;  %v87_v31 = vmul.f32 %v1556_v14, %v1556_v14  ;;  %vm1045_vm5 = vcmask 64512  }
  0x13   :  { %1173 = vmatprep.subr.bf16.mxu1 %v1465_v20  ;;  %v1700_v49 = vpack.c.bf16 %v52_v48, %v51_v47  ;;  %v1712_v52 = vpack.c.bf16 %v54_v51, %v53_v50  ;;  %v55_v53 = vld [vmem:[%s2042_s3 + $0x80] sm:$0xff]  ;;  %v56_v54 = vld [vmem:[%s2042_s3 + $0x88] sm:$0xff]  ;;  %v57_v56 = vld [vmem:[%s2042_s3 + $0x90] sm:$0xff]  ;;  %v1254_v33 = vpack.c.bf16 %v83_v25, %v81_v23  ;;  %v86_v42 = vmul.f32 %v1535_v9, %v1535_v9 }
  0x14   :  { %1079 = vmatmul.mubr.msk.f32.vlgmr.msra.gmra.mrb[4].mxu0 %vm105_vm3, %v1604_v27  ;;  %v1724_v55 = vpack.c.bf16 %v56_v54, %v55_v53  ;;  %v58_v57 = vld [vmem:[%s2042_s3 + $0x98] sm:$0xff]  ;;  %v59_v59 = vld [vmem:[%s2042_s3 + $0xa0] sm:$0xff]  ;;  %v60_v60 = vld [vmem:[%s2042_s3 + $0xa8] sm:$0xff]  ;;  %v1259_v34 = vpack.c.bf16 %v87_v31, %v85_v28  ;;  %v88_v44 = vmul.f32 %v1540_v10, %v1540_v10  ;;  %v90_v50 = vmul.f32 %v1523_v6, %v1523_v6 }
  0x15   :  { %354 = vmatprep.mubr.f32.mxu0 %v1463_v5  ;;  %1215 = vmatpush1.bf16.msra.mxu0 %v1591_v24  ;;  %v1736_v58 = vpack.c.bf16 %v58_v57, %v57_v56  ;;  %v1748_v61 = vpack.c.bf16 %v60_v60, %v59_v59  ;;  %v61_v62 = vld [vmem:[%s2042_s3 + $0xb0] sm:$0xff]  ;;  %v62_v63 = vld [vmem:[%s2042_s3 + $0xb8] sm:$0xff]  ;;  %v63_v8 = vld [vmem:[%s2042_s3 + $0xc0] sm:$0xff]  ;;  %v92_v51 = vmul.f32 %v1528_v7, %v1528_v7  ;;  %vm1055_vm6 = vcmask 57344  }
  0x16   :  { %1216 = vmatprep.subr.bf16.mxu0 %v1465_v20  ;;  %1175 = vmatpush1.bf16.msra.mxu1 %v1659_v40  ;;  %v1760_v2 = vpack.c.bf16 %v62_v63, %v61_v62  ;;  %v64_v13 = vld [vmem:[%s2042_s3 + $0xc8] sm:$0xff]  ;;  %v1256_v48 = vpack.c.bf16 %v88_v44, %v86_v42  ;;  %v89_v54 = vmul.f32 %v1561_v15, %v1561_v15 }
  0x17   :  { %1176 = vmatprep.subr.bf16.mxu1 %v1465_v20  ;;  %v1779_v17 = vpack.c.bf16 %v64_v13, %v63_v8  ;;  %v91_v56 = vmul.f32 %v1566_v16, %v1566_v16  ;;  %v1301_v59 = vpack.c.bf16 %v92_v51, %v90_v50  ;;  %v94_v60 = vmul.f32 %v1575_v19, %v1575_v19  ;;  %v66_v11 = vld [vmem:[%s2043_s4 + $0x8] sm:$0xff] }
  0x18   :  { %1080 = vmatmul.mubr.msk.f32.gmra.mrb[6].mxu0 %vm105_vm3, %v1636_v35  ;;  %v96_v62 = vmul.f32 %v1583_v21, %v1583_v21  ;;  %v93_v8 = vmul.f32 %v1611_v29, %v1611_v29  ;;  %v95_v13 = vmul.f32 %v1616_v30, %v1616_v30  ;;  %v98_v23 = vmul.f32 %v1523_v6, %v1500_v0 }
  0x19   :  { %1218 = vmatpush1.bf16.msra.mxu0 %v1621_v32  ;;  %v1303_v63 = vpack.c.bf16 %v91_v56, %v89_v54  ;;  %v100_v25 = vmul.f32 %v1528_v7, %v1505_v1  ;;  %v99_v28 = vmul.f32 %v1566_v16, %v1517_v4  ;;  %v102_v16 = vmul.f32 %v1575_v19, %v1535_v9 }
  0x1a   :  { %1219 = vmatprep.subr.bf16.mxu0 %v1465_v20  ;;  %1178 = vmatpush1.bf16.msra.mxu1 %v1674_v43  ;;  %v1305_v18 = vpack.c.bf16 %v96_v62, %v94_v60  ;;  %v1308_v22 = vpack.c.bf16 %v95_v13, %v93_v8 }
  0x1b   :  { %1179 = vmatprep.subr.bf16.mxu1 %v1465_v20  ;;  %v1350_v31 = vpack.c.bf16 %v100_v25, %v98_v23 }
  0x1d   :  { %1221 = vmatpush1.bf16.msra.mxu0 %v1643_v37 }
  0x1e   :  { %1222 = vmatprep.subr.bf16.mxu0 %v1465_v20  ;;  %1181 = vmatpush1.bf16.msra.mxu1 %v1688_v46 }
  0x1f   :  { %1182 = vmatprep.subr.bf16.mxu1 %v1465_v20 }
  0x21   :  { %1224 = vmatpush1.bf16.msra.mxu0 %v1659_v40 }
  0x22   :  { %1225 = vmatprep.subr.bf16.mxu0 %v1465_v20  ;;  %1184 = vmatpush1.bf16.msra.mxu1 %v1700_v49 }
  0x23   :  { %1185 = vmatprep.subr.bf16.mxu1 %v1465_v20 }
  0x25   :  { %1227 = vmatpush1.bf16.msra.mxu0 %v1674_v43 }
  0x26   :  { %1228 = vmatprep.subr.bf16.mxu0 %v1465_v20  ;;  %1187 = vmatpush1.bf16.msra.mxu1 %v1712_v52 }
  0x27   :  { %1188 = vmatprep.subr.bf16.mxu1 %v1465_v20 }
  0x29   :  { %1230 = vmatpush1.bf16.msra.mxu0 %v1688_v46 }
  0x2a   :  { %1231 = vmatprep.subr.bf16.mxu0 %v1465_v20  ;;  %1190 = vmatpush1.bf16.msra.mxu1 %v1724_v55 }
  0x2b   :  { %1191 = vmatprep.subr.bf16.mxu1 %v1465_v20 }
  0x2d   :  { %1233 = vmatpush1.bf16.msra.mxu0 %v1700_v49 }
  0x2e   :  { %1234 = vmatprep.subr.bf16.mxu0 %v1465_v20  ;;  %1193 = vmatpush1.bf16.msra.mxu1 %v1736_v58 }
  0x2f   :  { %1194 = vmatprep.subr.bf16.mxu1 %v1465_v20 }
  0x31   :  { %1236 = vmatpush1.bf16.msra.mxu0 %v1712_v52 }
  0x32   :  { %1237 = vmatprep.subr.bf16.mxu0 %v1465_v20  ;;  %1196 = vmatpush1.bf16.msra.mxu1 %v1748_v61 }
  0x33   :  { %1197 = vmatprep.subr.bf16.mxu1 %v1465_v20 }
  0x35   :  { %1239 = vmatpush1.bf16.msra.mxu0 %v1724_v55 }
  0x36   :  { %1240 = vmatprep.subr.bf16.mxu0 %v1465_v20  ;;  %1199 = vmatpush1.bf16.msra.mxu1 %v1760_v2 }
  0x37   :  { %1200 = vmatprep.subr.bf16.mxu1 %v1465_v20 }
  0x39   :  { %1242 = vmatpush1.bf16.msra.mxu0 %v1736_v58 }
  0x3a   :  { %1243 = vmatprep.subr.bf16.mxu0 %v1465_v20  ;;  %1202 = vmatpush1.bf16.msra.mxu1 %v1779_v17 }
  0x3b   :  { %1262 = vmatprep.subr.bf16.mxu1 %v1465_v20 }
  0x3d   :  { %1245 = vmatpush1.bf16.msra.mxu0 %v1748_v61 }
  0x3e   :  { %1246 = vmatprep.subr.bf16.mxu0 %v1465_v20 }
  0x41   :  { %1248 = vmatpush1.bf16.msra.mxu0 %v1760_v2 }
  0x42   :  { %1249 = vmatprep.subr.bf16.mxu0 %v1465_v20 }
  0x45   :  { %1251 = vmatpush1.bf16.msra.mxu0 %v1779_v17 }
  0x46   :  { %1253 = vmatprep.subr.bf16.mxu0 %v1252_v26  ;;  %v97_v26 = vmul.f32 %v1561_v15, %v1512_v3 }
  0xdf   :  { %v185_v36 = vpop.f32.mrb[0].mxu0 }
  0xe0   :  { %v187_v38 = vpop.f32.mrb[1].mxu0 }
  0xe1   :  { %1075 = vmatprep.mubr.msk.f32.mxu1 %vm196_vm4, %v187_v38 }
  0xe2   :  { %268 = vmatmul.mubr.f32.vlgmr.msra.gmra.mrb[0].mxu1 %v185_v36  ;;  %v1352_v36 = vpack.c.bf16 %v99_v28, %v97_v26 }
  0xe3   :  { %v191_v39 = vpop.f32.mrb[2].mxu0  ;;  %1264 = vmatpush1.bf16.msra.mxu1 %v1591_v24 }
  0xe4   :  { %v193_v41 = vpop.f32.mrb[3].mxu0  ;;  %1265 = vmatprep.subr.bf16.mxu1 %v1465_v20 }
  0xe5   :  { %1076 = vmatprep.mubr.msk.f32.mxu1 %vm196_vm4, %v193_v41 }
  0xe6   :  { %273 = vmatmul.mubr.f32.gmra.mrb[2].mxu1 %v191_v39 }
  0xe7   :  { %v350_v45 = vpop.f32.mrb[4].mxu0  ;;  %1267 = vmatpush1.bf16.msra.mxu1 %v1621_v32 }
  0xe8   :  { %v352_v47 = vpop.f32.mrb[5].mxu0  ;;  %1268 = vmatprep.subr.bf16.mxu1 %v1465_v20 }
  0xe9   :  { %1081 = vmatprep.mubr.msk.f32.mxu0 %vm196_vm4, %v352_v47 }
  0xea   :  { %432 = vmatmul.mubr.f32.vlgmr.msra.gmra.mrb[8].mxu0 %v350_v45  ;;  %v104_v45 = vmul.f32 %v1583_v21, %v1540_v10 }
  0xeb   :  { %v356_v53 = vpop.f32.mrb[6].mxu0  ;;  %1255 = vmatpush1.bf16.msra.mxu0 %v1254_v33  ;;  %1270 = vmatpush1.bf16.msra.mxu1 %v1643_v37  ;;  %v101_v33 = vmul.f32 %v1611_v29, %v1549_v12 }
  0xec   :  { %v358_v57 = vpop.f32.mrb[7].mxu0  ;;  %1258 = vmatprep.subr.msk.bf16.mxu0 %vm1542_vm2, %v1256_v48  ;;  %1271 = vmatprep.subr.bf16.mxu1 %v1465_v20  ;;  %v1354_v51 = vpack.c.bf16 %v104_v45, %v102_v16 }
  0xed   :  { %1082 = vmatprep.mubr.msk.f32.mxu0 %vm196_vm4, %v358_v57 }
  0xee   :  { %437 = vmatmul.mubr.f32.gmra.mrb[10].mxu0 %v356_v53 }
  0xef   :  { %1261 = vmatpush1.bf16.msk.msra.mxu0 %vm1542_vm2, %v1259_v34  ;;  %512 = vmatprep.mubr.f32.mxu0 %v1463_v5  ;;  %v103_v34 = vmul.f32 %v1616_v30, %v1556_v14 }
  0xf0   :  { %1302 = vmatprep.subr.bf16.mxu0 %v1301_v59  ;;  %1273 = vmatpush1.bf16.msra.mxu1 %v1659_v40 }
  0xf1   :  { %1274 = vmatprep.subr.bf16.mxu1 %v1465_v20  ;;  %v1357_v38 = vpack.c.bf16 %v103_v34, %v101_v33 }
  0xf2   :  { %1085 = vmatmul.mubr.msk.f32.vlgmr.msra.gmra.mrb[12].mxu0 %vm105_vm3, %v1604_v27 }
  0xf3   :  { %1304 = vmatpush1.bf16.msra.mxu0 %v1303_v63  ;;  %518 = vmatprep.mubr.f32.mxu0 %v1463_v5 }
  0xf4   :  { %1307 = vmatprep.subr.msk.bf16.mxu0 %vm1542_vm2, %v1305_v18  ;;  %1276 = vmatpush1.bf16.msra.mxu1 %v1674_v43 }
  0xf5   :  { %1277 = vmatprep.subr.bf16.mxu1 %v1465_v20 }
  0xf6   :  { %1086 = vmatmul.mubr.msk.f32.gmra.mrb[14].mxu0 %vm105_vm3, %v1636_v35 }
  0xf7   :  { %1310 = vmatpush1.bf16.msk.msra.mxu0 %vm1542_vm2, %v1308_v22  ;;  %676 = vmatprep.mubr.f32.mxu0 %v1463_v5 }
  0xf8   :  { %1311 = vmatprep.subr.bf16.mxu0 %v1465_v20  ;;  %1279 = vmatpush1.bf16.msra.mxu1 %v1688_v46 }
  0xf9   :  { %1280 = vmatprep.subr.bf16.mxu1 %v1465_v20 }
  0xfa   :  { %1091 = vmatmul.mubr.msk.f32.vlgmr.msra.gmra.mrb[16].mxu0 %vm105_vm3, %v1604_v27 }
  0xfb   :  { %682 = vmatprep.mubr.f32.mxu0 %v1463_v5  ;;  %1313 = vmatpush1.bf16.msra.mxu0 %v1591_v24 }
  0xfc   :  { %1314 = vmatprep.subr.bf16.mxu0 %v1465_v20  ;;  %1282 = vmatpush1.bf16.msra.mxu1 %v1700_v49 }
  0xfd   :  { %1283 = vmatprep.subr.bf16.mxu1 %v1465_v20 }
  0xfe   :  { %1092 = vmatmul.mubr.msk.f32.gmra.mrb[18].mxu0 %vm105_vm3, %v1636_v35 }
  0xff   :  { %1316 = vmatpush1.bf16.msra.mxu0 %v1621_v32 }
 0x100   :  { %1317 = vmatprep.subr.bf16.mxu0 %v1465_v20  ;;  %1285 = vmatpush1.bf16.msra.mxu1 %v1712_v52 }
 0x101   :  { %1286 = vmatprep.subr.bf16.mxu1 %v1465_v20 }
 0x103   :  { %1319 = vmatpush1.bf16.msra.mxu0 %v1643_v37 }
 0x104   :  { %1320 = vmatprep.subr.bf16.mxu0 %v1465_v20  ;;  %1288 = vmatpush1.bf16.msra.mxu1 %v1724_v55 }
 0x105   :  { %1289 = vmatprep.subr.bf16.mxu1 %v1465_v20 }
 0x107   :  { %1322 = vmatpush1.bf16.msra.mxu0 %v1659_v40 }
 0x108   :  { %1323 = vmatprep.subr.bf16.mxu0 %v1465_v20  ;;  %1291 = vmatpush1.bf16.msra.mxu1 %v1736_v58 }
 0x109   :  { %1292 = vmatprep.subr.bf16.mxu1 %v1465_v20 }
 0x10b   :  { %1325 = vmatpush1.bf16.msra.mxu0 %v1674_v43 }
 0x10c   :  { %1326 = vmatprep.subr.bf16.mxu0 %v1465_v20  ;;  %1294 = vmatpush1.bf16.msra.mxu1 %v1748_v61 }
 0x10d   :  { %1295 = vmatprep.subr.bf16.mxu1 %v1465_v20 }
 0x10f   :  { %1328 = vmatpush1.bf16.msra.mxu0 %v1688_v46 }
 0x110   :  { %1329 = vmatprep.subr.bf16.mxu0 %v1465_v20  ;;  %1297 = vmatpush1.bf16.msra.mxu1 %v1760_v2 }
 0x111   :  { %1298 = vmatprep.subr.bf16.mxu1 %v1465_v20 }
 0x113   :  { %1331 = vmatpush1.bf16.msra.mxu0 %v1700_v49 }
 0x114   :  { %1332 = vmatprep.subr.bf16.mxu0 %v1465_v20  ;;  %1300 = vmatpush1.bf16.msra.mxu1 %v1779_v17 }
 0x115   :  { %1351 = vmatprep.subr.bf16.mxu1 %v1350_v31 }
 0x117   :  { %1334 = vmatpush1.bf16.msra.mxu0 %v1712_v52 }
 0x118   :  { %1335 = vmatprep.subr.bf16.mxu0 %v1465_v20 }
 0x11b   :  { %1337 = vmatpush1.bf16.msra.mxu0 %v1724_v55 }
 0x11c   :  { %1338 = vmatprep.subr.bf16.mxu0 %v1465_v20 }
 0x11f   :  { %1340 = vmatpush1.bf16.msra.mxu0 %v1736_v58 }
 0x120   :  { %1341 = vmatprep.subr.bf16.mxu0 %v1465_v20 }
 0x123   :  { %1343 = vmatpush1.bf16.msra.mxu0 %v1748_v61 }
 0x124   :  { %1344 = vmatprep.subr.bf16.mxu0 %v1465_v20 }
 0x127   :  { %1346 = vmatpush1.bf16.msra.mxu0 %v1760_v2 }
 0x128   :  { %1347 = vmatprep.subr.bf16.mxu0 %v1465_v20 }
 0x12b   :  { %1349 = vmatpush1.bf16.msra.mxu0 %v1779_v17 }
 0x1b5   :  { %v269_v0 = vpop.f32.mrb[0].mxu1 }
 0x1b6   :  { %v271_v6 = vpop.f32.mrb[1].mxu1  ;;  %v1903_v41 = vmul.f32 %v269_v0, %v269_v0 }
 0x1b9   :  { %v274_v39 = vpop.f32.mrb[2].mxu1 }
 0x1ba   :  { %v276_v1 = vpop.f32.mrb[3].mxu1  ;;  %v1915_v29 = vmul.f32 %v274_v39, %v274_v39 }
 0x1bb   :  { %v76_v1 = vld [vmem:[%s2043_s4 + $0x58] sm:$0xff] }
 0x1bd   :  { %v433_v7 = vpop.f32.mrb[8].mxu0 }
 0x1be   :  { %v1905_v3 = vmul.f32 %v433_v7, %v433_v7  ;;  %v1907_v4 = vmul.f32 %v433_v7, %v269_v0  ;;  %v435_v15 = vpop.f32.mrb[9].mxu0 }
 0x1c0   :  { %v1911_v12 = vadd.f32 %v1905_v3, %v1903_v41 }
 0x1c1   :  { %v438_v14 = vpop.f32.mrb[10].mxu0 }
 0x1c2   :  { %v1917_v30 = vmul.f32 %v438_v14, %v438_v14  ;;  %v1919_v42 = vmul.f32 %v438_v14, %v274_v39  ;;  %v440_v44 = vpop.f32.mrb[11].mxu0  ;;  %v958_v25 = vadd.f32 0.0001, %v1911_v12  ;;  %v75_v39 = vld [vmem:[%s2043_s4 + $0x50] sm:$0xff]  ;;  %v80_v14 = vld [vmem:[%s2043_s4 + $0x78] sm:$0xff] }
 0x1c3   :  { %v1419_v7 = vpack.c.bf16 %v76_v1, %v75_v39  ;;  %v79_v12 = vld [vmem:[%s2043_s4 + $0x70] sm:$0xff] }
 0x1c4   :  { %v1925_v47 = vadd.f32 %v1917_v30, %v1915_v29  ;;  %v1427_v16 = vpack.c.bf16 %v80_v14, %v79_v12 }
 0x1c5   :  { %v514_v48 = vpop.f32.mrb[12].mxu0 }
 0x1c6   :  { %v516_v50 = vpop.f32.mrb[13].mxu0 }
 0x1c7   :  { %1087 = vmatprep.mubr.msk.f32.mxu1 %vm196_vm4, %v516_v50 }
 0x1c8   :  { %596 = vmatmul.mubr.f32.vlgmr.msra.gmra.mrb[4].mxu1 %v514_v48 }
 0x1c9   :  { %v520_v9 = vpop.f32.mrb[14].mxu0  ;;  %1353 = vmatpush1.bf16.msra.mxu1 %v1352_v36 }
 0x1ca   :  { %v522_v19 = vpop.f32.mrb[15].mxu0  ;;  %1356 = vmatprep.subr.msk.bf16.mxu1 %vm1542_vm2, %v1354_v51  ;;  %v947_v51 = vmul.f32 2.0, %v1919_v42 }
 0x1cb   :  { %1088 = vmatprep.mubr.msk.f32.mxu1 %vm196_vm4, %v522_v19 }
 0x1cc   :  { %601 = vmatmul.mubr.f32.gmra.mrb[6].mxu1 %v520_v9 }
 0x1cd   :  { %v678_v10 = vpop.f32.mrb[16].mxu0  ;;  %1359 = vmatpush1.bf16.msk.msra.mxu1 %vm1542_vm2, %v1357_v38  ;;  %840 = vmatprep.mubr.f32.mxu1 %v1463_v5  ;;  %v959_v38 = vadd.f32 0.0001, %v1925_v47 }
 0x1ce   :  { %v680_v21 = vpop.f32.mrb[17].mxu0  ;;  %1360 = vmatprep.subr.bf16.mxu1 %v1465_v20 }
 0x1cf   :  { %1093 = vmatprep.mubr.msk.f32.mxu0 %vm196_vm4, %v680_v21 }
 0x1d0   :  { %760 = vmatmul.mubr.f32.vlgmr.msra.gmra.mrb[20].mxu0 %v678_v10  ;;  %1097 = vmatmul.mubr.msk.f32.vlgmr.msra.gmra.mrb[8].mxu1 %vm105_vm3, %v1604_v27 }
 0x1d1   :  { %v684_v53 = vpop.f32.mrb[18].mxu0  ;;  %846 = vmatprep.mubr.f32.mxu1 %v1463_v5  ;;  %1362 = vmatpush1.bf16.msra.mxu1 %v1591_v24  ;;  %v65_v5 = vld [vmem:[%s2043_s4] sm:$0xff]  ;;  %v67_v24 = vld [vmem:[%s2043_s4 + $0x10] sm:$0xff] }
 0x1d2   :  { %v686_v54 = vpop.f32.mrb[19].mxu0  ;;  %1363 = vmatprep.subr.bf16.mxu1 %v1465_v20  ;;  %v1399_v27 = vpack.c.bf16 %v66_v11, %v65_v5  ;;  %v949_v5 = vadd.f32 0.0001, %v947_v51 }
 0x1d3   :  { %1094 = vmatprep.mubr.msk.f32.mxu0 %vm196_vm4, %v686_v54 }
 0x1d4   :  { %765 = vmatmul.mubr.f32.gmra.mrb[22].mxu0 %v684_v53  ;;  %1098 = vmatmul.mubr.msk.f32.gmra.mrb[10].mxu1 %vm105_vm3, %v1636_v35  ;;  %v69_v35 = vld [vmem:[%s2043_s4 + $0x20] sm:$0xff] }
 0x1d5   :  { %1365 = vmatpush1.bf16.msra.mxu1 %v1621_v32  ;;  %v68_v32 = vld [vmem:[%s2043_s4 + $0x18] sm:$0xff]  ;;  %1400 = vmatprep.subr.bf16.mxu0 %v1399_v27 }
 0x1d6   :  { %1366 = vmatprep.subr.bf16.mxu1 %v1465_v20  ;;  %1402 = vmatpush3.bf16.msra.mxu0 %v1399_v27 }
 0x1d9   :  { %1368 = vmatpush1.bf16.msra.mxu1 %v1643_v37  ;;  %v70_v37 = vld [vmem:[%s2043_s4 + $0x28] sm:$0xff] }
 0x1da   :  { %1369 = vmatprep.subr.bf16.mxu1 %v1465_v20 }
 0x1dd   :  { %1371 = vmatpush1.bf16.msra.mxu1 %v1659_v40  ;;  %v1407_v40 = vpack.c.bf16 %v70_v37, %v69_v35 }
 0x1de   :  { %1372 = vmatprep.subr.bf16.mxu1 %v1465_v20 }
 0x1e1   :  { %1374 = vmatpush1.bf16.msra.mxu1 %v1674_v43  ;;  %v71_v43 = vld [vmem:[%s2043_s4 + $0x30] sm:$0xff] }
 0x1e2   :  { %1375 = vmatprep.subr.bf16.mxu1 %v1465_v20 }
 0x1e5   :  { %1377 = vmatpush1.bf16.msra.mxu1 %v1688_v46  ;;  %v72_v46 = vld [vmem:[%s2043_s4 + $0x38] sm:$0xff] }
 0x1e6   :  { %1378 = vmatprep.subr.bf16.mxu1 %v1465_v20 }
 0x1e9   :  { %1380 = vmatpush1.bf16.msra.mxu1 %v1700_v49  ;;  %v1411_v49 = vpack.c.bf16 %v72_v46, %v71_v43 }
 0x1ea   :  { %1381 = vmatprep.subr.bf16.mxu1 %v1465_v20 }
 0x1ed   :  { %1383 = vmatpush1.bf16.msra.mxu1 %v1712_v52  ;;  %v73_v52 = vld [vmem:[%s2043_s4 + $0x40] sm:$0xff] }
 0x1ee   :  { %1384 = vmatprep.subr.bf16.mxu1 %v1465_v20 }
 0x1f1   :  { %1386 = vmatpush1.bf16.msra.mxu1 %v1724_v55  ;;  %v74_v55 = vld [vmem:[%s2043_s4 + $0x48] sm:$0xff] }
 0x1f2   :  { %1387 = vmatprep.subr.bf16.mxu1 %v1465_v20 }
 0x1f5   :  { %1389 = vmatpush1.bf16.msra.mxu1 %v1736_v58  ;;  %v1415_v58 = vpack.c.bf16 %v74_v55, %v73_v52 }
 0x1f6   :  { %1390 = vmatprep.subr.bf16.mxu1 %v1465_v20 }
 0x1f9   :  { %1392 = vmatpush1.bf16.msra.mxu1 %v1748_v61 }
 0x1fa   :  { %1393 = vmatprep.subr.bf16.mxu1 %v1465_v20 }
 0x1fd   :  { %1395 = vmatpush1.bf16.msra.mxu1 %v1760_v2 }
 0x1fe   :  { %1396 = vmatprep.subr.bf16.mxu1 %v1465_v20  ;;  %v1403_v20 = vpack.c.bf16 %v68_v32, %v67_v24 }
 0x200   :  { %1404 = vmatprep.subr.bf16.mxu0 %v1403_v20 }
 0x201   :  { %1398 = vmatpush1.bf16.msra.mxu1 %v1779_v17  ;;  %1406 = vmatpush3.bf16.msra.mxu0 %v1403_v20 }
 0x202   :  { %1408 = vmatprep.subr.bf16.mxu0 %v1407_v40 }
 0x205   :  { %1410 = vmatpush3.bf16.msra.mxu0 %v1407_v40 }
 0x206   :  { %1412 = vmatprep.subr.bf16.mxu0 %v1411_v49 }
 0x209   :  { %1414 = vmatpush3.bf16.msra.mxu0 %v1411_v49 }
 0x20a   :  { %1416 = vmatprep.subr.bf16.mxu0 %v1415_v58 }
 0x20d   :  { %1418 = vmatpush3.bf16.msra.mxu0 %v1415_v58 }
 0x20e   :  { %1420 = vmatprep.subr.bf16.mxu0 %v1419_v7 }
 0x211   :  { %1422 = vmatpush3.bf16.msra.mxu0 %v1419_v7 }
 0x29b   :  { %v597_v61 = vpop.f32.mrb[4].mxu1 }
 0x29c   :  { %v940_v2 = vsub.f32 %v597_v61, %v1903_v41  ;;  %v599_v17 = vpop.f32.mrb[5].mxu1  ;;  %v77_v41 = vld [vmem:[%s2043_s4 + $0x60] sm:$0xff] }
 0x29f   :  { %v602_v56 = vpop.f32.mrb[6].mxu1 }
 0x2a0   :  { %v941_v57 = vsub.f32 %v602_v56, %v1915_v29  ;;  %v604_v59 = vpop.f32.mrb[7].mxu1 }
 0x2a3   :  { %v761_v60 = vpop.f32.mrb[20].mxu0  ;;  %v842_v62 = vpop.f32.mrb[8].mxu1 }
 0x2a4   :  { %v942_v63 = vsub.f32 %v761_v60, %v1905_v3  ;;  %v844_v8 = vpop.f32.mrb[9].mxu1  ;;  %v763_v13 = vpop.f32.mrb[21].mxu0  ;;  %v78_v3 = vld [vmem:[%s2043_s4 + $0x68] sm:$0xff]  ;;  %s1466_s4 = smov [#allocation2]  }
 0x2a5   :  { %1099 = vmatprep.mubr.msk.f32.mxu1 %vm196_vm4, %v844_v8  ;;  %v1423_v15 = vpack.c.bf16 %v78_v3, %v77_v41  ;;  %s1063_s26 = sshll.u32 %s1466_s4, 4  ;;  %s1064_s26 = int_to_ptr.vmem [resolvable:$true] %s1063_s26 }
 0x2a6   :  { %v960_v18 = vadd.f32 %v942_v63, %v940_v2  ;;  %924 = vmatmul.mubr.f32.vlgmr.msra.gmra.mrb[12].mxu1 %v842_v62  ;;  %s1439_s27 = scalar_lea.vmem %s1064_s26, 16  ;;  %s1443_s28 = scalar_lea.vmem %s1064_s26, 32 }
 0x2a7   :  { %v766_v22 = vpop.f32.mrb[22].mxu0  ;;  %v848_v23 = vpop.f32.mrb[10].mxu1  ;;  %1424 = vmatprep.subr.bf16.mxu0 %v1423_v15  ;;  %p1440_p0 = scmp.ne.s32.totalorder %s1064_s26, %s1439_s27  ;;  %p1444_p1 = scmp.lt.s32.totalorder %s1064_s26, %s1064_s26 }
 0x2a8   :  { %v962_v26 = vadd.f32 0.0009, %v960_v18  ;;  %v943_v28 = vsub.f32 %v766_v22, %v1917_v30  ;;  %v850_v31 = vpop.f32.mrb[11].mxu1  ;;  %v768_v33 = vpop.f32.mrb[23].mxu0  ;;  %1426 = vmatpush3.bf16.msra.mxu0 %v1423_v15  ;;  %v946_v30 = vmul.f32 2.0, %v1907_v4  ;;  %p1445_p2 = scmp.lt.s32.totalorder %s1443_s28, %s1439_s27 }
 0x2a9   :  { %1100 = vmatprep.mubr.msk.f32.mxu1 %vm196_vm4, %v850_v31  ;;  %1428 = vmatprep.subr.bf16.mxu0 %v1427_v16 }
 0x2aa   :  { %v964_v34 = vmul.f32 %v962_v26, %v958_v25  ;;  %v961_v36 = vadd.f32 %v943_v28, %v941_v57  ;;  %929 = vmatmul.mubr.f32.gmra.mrb[14].mxu1 %v848_v23  ;;  %v948_v50 = vadd.f32 0.0001, %v946_v30  ;;  %p1446_p3 = por %p1445_p2, %p1444_p1 }
 0x2ac   :  { %v963_v0 = vadd.f32 0.0009, %v961_v36  ;;  %1430 = vmatpush3.bf16.msra.mxu0 %v1427_v16  ;;  %1435 = vrcp.f32 %v964_v34  ;;  %p1447_p4 = pnand %p1446_p3, %p1440_p0 }
 0x2ae   :  { %v965_v6 = vmul.f32 %v963_v0, %v959_v38 }
 0x2b0   :  { %1437 = vrcp.f32 %v965_v6 }
 0x2b6   :  { %v1436_v54 = vpop.eup %1435 }
 0x379   :  { %v925_v29 = vpop.f32.mrb[12].mxu1 }
 0x37a   :  { %v944_v44 = vsub.f32 %v925_v29, %v1907_v4  ;;  %v927_v45 = vpop.f32.mrb[13].mxu1  ;;  %v1438_v4 = vpop.eup %1437 }
 0x37c   :  { %v950_v47 = vmul.f32 2.0, %v944_v44 }
 0x37d   :  { %v930_v48 = vpop.f32.mrb[14].mxu1 }
 0x37e   :  { %v952_v9 = vadd.f32 0.0009, %v950_v47  ;;  %v945_v19 = vsub.f32 %v930_v48, %v1919_v42  ;;  %v932_v10 = vpop.f32.mrb[15].mxu1 }
 0x380   :  { %v954_v21 = vmul.f32 %v952_v9, %v948_v50  ;;  %v951_v53 = vmul.f32 2.0, %v945_v19 }
 0x382   :  { %v953_v11 = vadd.f32 0.0009, %v951_v53  ;;  %v967_v24 = vmul.f32 %v1436_v54, %v954_v21 }
 0x384   :  { %v955_v27 = vmul.f32 %v953_v11, %v949_v5  ;;  %1151 = vmatprep.mubr.f32.mxu0 %v967_v24 }
 0x386   :  { %v969_v32 = vmul.f32 %v1438_v4, %v955_v27 }
 0x388   :  { %1152 = vmatmul.mubr.f32.vlgmr.msra.gmra.mrb[24].mxu0 %v969_v32 }
 0x45b   :  { %v1153_v20 = vpop.f32.mrb[24].mxu0 }
 0x45c   :  { %v1047_v35 = vsel %vm1045_vm5, %v1153_v20, 0.0  ;;  %v1036_v37 = vpop.f32.mrb[25].mxu0 }
 0x45d   :  { %v1046_v40 = vsel %vm1045_vm5, %v1036_v37, 0.0 }
 0x45e   :  { %v1048_v43 = vadd.f32 %v1047_v35, %v1046_v40 }
 0x460   :  { %v1049_v46 = vrot.slane %v1048_v43, 4 }
 0x462   :  { %v1050_v42 = vadd.f32 %v1049_v46, %v1048_v43 }
 0x464   :  { %v1051_v49 = vrot.slane %v1050_v42, 2 }
 0x466   :  { %v1052_v52 = vadd.f32 %v1051_v49, %v1050_v42 }
 0x468   :  { %v1053_v55 = vrot.slane %v1052_v52, 1 }
 0x46a   :  { %v1054_v58 = vadd.f32 %v1053_v55, %v1052_v52 }
 0x46c   :  { %1056 = vst.msk [vmem:[#allocation2] sm:$0x1] %vm1055_vm6, %v1054_v58 }
 0x46d   :  { %1450 = shalt.err (!%p1447_p4)
}
 0x46e   :  { %s1451_s6 = scalar_lea.hbm %s2044_s5, 16 }
 0x46f   :  { %p1452_p5 = scmp.ne.s32.totalorder %s2044_s5, %s1451_s6  ;;  %p1455_p6 = scmp.lt.u32.totalorder %s1451_s6, %s2044_s5 }
 0x471   :  { %p1457_p7 = pnand %p1455_p6, %p1452_p5 }
 0x473   :  { %1460 = shalt.err (!%p1457_p7)
}
 0x474   :  { %1066 = dma.vmem_to_hbm [thread:$0]  %s1064_s26, 16, %s2044_s5, [#allocation3]  }
 0x475   :  { %1461 = dma.done.wait [#allocation3], 16  }
 0x476   :  { %1462 = vsyncadd [#allocation3], 4294967280 }
 0x477   :  { %1070 = vsyncpa [#allocation3], 1 }

</bundles_post_ra>
